<compile_context>
chip_gen: v5e
topology: v5e:2x2
jax: 0.10.0
libtpu: 0.0.40
codegen_flags: <defaults>
</compile_context>

<pallas_src>
import functools

import jax
import jax.numpy as jnp
from jax.experimental import pallas as pl
from jax.experimental.pallas import tpu as pltpu

# Same primes as the PyTorch buffer `primes`.
PRIMES = (1, 19349663, 83492791, 48397621)


def _hashed_grid_kernel(idx_ref, table_ref, out_ref, *, num_entries, pow2):
    """idx_ref: (D, TM) int32, table_ref: (F, N), out_ref: (F, TM)."""
    idx = idx_ref[...]                              # (D, TM), TM on the lane axis
    d, tm = idx.shape

    # Spatial hash, mirroring HashedGrid.hash_index.
    h = idx[0:1, :] * PRIMES[0]                     # (1, TM)
    if pow2:
        # xor is bitwise, so every intermediate "% N" (N = 2**k) collapses into
        # one final low-bit mask; this also covers the D == 1 case and keeps h
        # non-negative / in-range before the one-hot compare.
        for i in range(1, d):
            h = jnp.bitwise_xor(h, idx[i:i + 1, :] * PRIMES[i])
        h = jnp.bitwise_and(h, num_entries - 1)
    else:
        # TODO(synk): non-power-of-two N keeps int32 products; coordinates large
        # enough to overflow int32 may hash differently from the int64 PyTorch
        # reference on this fallback path.
        for i in range(1, d):
            h = jnp.bitwise_xor(h, idx[i:i + 1, :] * PRIMES[i]) % num_entries
        h = h % num_entries                         # covers D == 1 as well

    # Embedding gather via one-hot matmul on the MXU: (F, N) @ (N, TM) -> (F, TM).
    # One-hot entries (0/1) are exact in the table's dtype, so a bf16 table
    # feeds the fast bf16 MXU path on v6e/v7x while keeping exact selection
    # (accumulation stays f32 via preferred_element_type).
    iota = jax.lax.broadcasted_iota(jnp.int32, (num_entries, tm), 0)
    one_hot = (iota == h).astype(table_ref.dtype)   # (N, TM)
    out_ref[...] = jnp.dot(
        table_ref[...], one_hot, preferred_element_type=jnp.float32
    ).astype(out_ref.dtype)


def hashed_grid_forward(idx, table, *, tile_m=512):
    """Pallas forward of HashedGrid: idx (..., D) int -> (..., F) in table dtype."""
    *lead, d = idx.shape
    n, f = table.shape

    idx_t = idx.reshape(-1, d).astype(jnp.int32).T      # (D, M): M is lane-dense
    table_t = table.T                                    # (F, N)
    m = idx_t.shape[1]

    # --- tile sizing --------------------------------------------------------
    # tile_m must be a multiple of 128 (lane width of idx / output blocks).
    tile_m = max(128, (tile_m // 128) * 128)
    # Cap by the (N, tile_m) one-hot intermediate (~8 MiB budget) so larger
    # tables don't blow VMEM (v7x only has 64 MiB per TensorCore).
    itemsize = jnp.dtype(table.dtype).itemsize
    onehot_cap = max(128, (8 * 1024 * 1024 // max(1, n * itemsize)) // 128 * 128)
    tile_m = min(tile_m, onehot_cap)
    # Keep >= 2 grid steps when the problem allows it, so the "parallel" grid
    # axis can be sharded across v7x's two TensorCores.
    half_m = max(128, pl.cdiv(m, 2 * 128) * 128)
    tile_m = min(tile_m, half_m)
    # No host-side padding / slicing: Pallas masks the partial edge block.
    grid_m = pl.cdiv(m, tile_m)

    pow2 = n > 0 and (n & (n - 1)) == 0
    kernel = functools.partial(_hashed_grid_kernel, num_entries=n, pow2=pow2)

    # TODO(synk): for production hash-grid sizes (N >= 2**14) the full-table
    # one-hot path should be replaced by an N-tiled / row-gather kernel; this
    # implementation targets VMEM-resident tables.
    out_t = pl.pallas_call(
        kernel,
        out_shape=jax.ShapeDtypeStruct((f, m), table.dtype),
        grid_spec=pltpu.PrefetchScalarGridSpec(
            num_scalar_prefetch=0,
            grid=(grid_m,),
            in_specs=[
                pl.BlockSpec((d, tile_m), lambda i: (0, i)),   # idx tile, lane-dense
                pl.BlockSpec((f, n), lambda i: (0, 0)),        # full table, VMEM-resident
            ],
            out_specs=pl.BlockSpec((f, tile_m), lambda i: (0, i)),
        ),
        compiler_params=pltpu.CompilerParams(
            dimension_semantics=("parallel",)),
        cost_estimate=pl.CostEstimate(
            flops=2 * m * n * f,
            transcendentals=0,
            bytes_accessed=m * d * 4 + n * f * itemsize + m * f * itemsize),
    )(idx_t, table_t)

    # One layout-only transpose outside the kernel (lane-dense stores inside).
    return out_t.T.reshape(*lead, f)


def hashed_grid_ref(idx, table):
    """Pure-JAX reference of the PyTorch forward (for a sanity check)."""
    n = table.shape[0]
    idx = idx.astype(jnp.int32)
    h = idx[..., 0] * PRIMES[0]
    for i in range(1, idx.shape[-1]):
        h = jnp.bitwise_xor(h, idx[..., i] * PRIMES[i]) % n
    return table[h]


if __name__ == "__main__":
    key = jax.random.PRNGKey(0)
    k_table, k_idx = jax.random.split(key)

    # HashedGrid(num_entries=512, num_features=32); Embedding weights ~ N(0, 1)
    num_entries, num_features = 512, 32
    table = jax.random.normal(k_table, (num_entries, num_features),
                              dtype=jnp.float32)

    # Integer 3-D grid coordinates (small, so no int32 overflow in the hash).
    idx = jax.random.randint(k_idx, (2, 128, 3), 0, 16, dtype=jnp.int32)

    out = hashed_grid_forward(idx, table)
    out = jax.block_until_ready(out)

    ref = hashed_grid_ref(idx, table)
    assert out.shape == (2, 128, num_features)
    assert jnp.allclose(out, ref, atol=1e-5), "Pallas output mismatches reference"

    # TODO(synk): Embedding max_norm in-place renormalization not implemented
    # (default max_norm=None, so forward semantics are unaffected).
    print("KERNEL_OK")
</pallas_src>

<mosaic_0001>
module attributes {stable_mosaic.version = 11 : i64} {
  func.func @_hashed_grid_kernel(%arg0: i32, %arg1: memref<3x128xi32, #tpu.memory_space<vmem>>, %arg2: memref<32x512xf32, #tpu.memory_space<vmem>>, %arg3: memref<32x128xf32, #tpu.memory_space<vmem>>) attributes {dimension_semantics = [#tpu.dimension_semantics<parallel>], iteration_bounds = array<i64: 2>, scalar_prefetch = 0 : i64, scratch_operands = 0 : i64, tpu.core_type = #tpu.core_type<tc>, window_params = [{transform_indices = @transform_0, window_bounds = array<i64: 3, 128>}, {pipeline_mode = #tpu.pipeline_mode<synchronous>, transform_indices = @transform_1, window_bounds = array<i64: 32, 512>}, {transform_indices = @transform_2, window_bounds = array<i64: 32, 128>}]} {
    %c0 = arith.constant 0 : index
    %c0_0 = arith.constant 0 : index
    %0 = vector.load %arg1[%c0, %c0_0] : memref<3x128xi32, #tpu.memory_space<vmem>>, vector<3x128xi32>
    %1 = vector.extract_strided_slice %0 {offsets = [0, 0], sizes = [1, 128], strides = [1, 1]} : vector<3x128xi32> to vector<1x128xi32>
    %c1_i32 = arith.constant 1 : i32
    %2 = vector.broadcast %c1_i32 : i32 to vector<1x128xi32>
    %3 = arith.muli %1, %2 : vector<1x128xi32>
    %4 = vector.extract_strided_slice %0 {offsets = [1, 0], sizes = [1, 128], strides = [1, 1]} : vector<3x128xi32> to vector<1x128xi32>
    %c19349663_i32 = arith.constant 19349663 : i32
    %5 = vector.broadcast %c19349663_i32 : i32 to vector<1x128xi32>
    %6 = arith.muli %4, %5 : vector<1x128xi32>
    %7 = arith.xori %3, %6 : vector<1x128xi32>
    %8 = vector.extract_strided_slice %0 {offsets = [2, 0], sizes = [1, 128], strides = [1, 1]} : vector<3x128xi32> to vector<1x128xi32>
    %c83492791_i32 = arith.constant 83492791 : i32
    %9 = vector.broadcast %c83492791_i32 : i32 to vector<1x128xi32>
    %10 = arith.muli %8, %9 : vector<1x128xi32>
    %11 = arith.xori %7, %10 : vector<1x128xi32>
    %c511_i32 = arith.constant 511 : i32
    %12 = vector.broadcast %c511_i32 : i32 to vector<1x128xi32>
    %13 = arith.andi %11, %12 : vector<1x128xi32>
    %14 = tpu.iota {dimensions = array<i32: 0>} : vector<512x128xi32>
    %15 = vector.broadcast %13 : vector<1x128xi32> to vector<512x128xi32>
    %16 = arith.cmpi eq, %14, %15 : vector<512x128xi32>
    %17 = arith.extui %16 : vector<512x128xi1> to vector<512x128xi32>
    %18 = arith.sitofp %17 : vector<512x128xi32> to vector<512x128xf32>
    %c0_1 = arith.constant 0 : index
    %c0_2 = arith.constant 0 : index
    %19 = vector.load %arg2[%c0_1, %c0_2] : memref<32x512xf32, #tpu.memory_space<vmem>>, vector<32x512xf32>
    %cst = arith.constant dense<0.000000e+00> : vector<32x128xf32>
    %20 = tpu.matmul %19, %18, %cst {dimension_numbers = #tpu.dot_dimension_numbers<[1], [0], [0], [1], [0, 0, 1, 1], [], []>} : vector<32x512xf32>, vector<512x128xf32>, vector<32x128xf32> -> vector<32x128xf32>
    %c0_3 = arith.constant 0 : index
    %c0_4 = arith.constant 0 : index
    %21 = vector.load %arg3[%c0_3, %c0_4] : memref<32x128xf32, #tpu.memory_space<vmem>>, vector<32x128xf32>
    tpu.vector_store %arg3[%c0_3, %c0_4], %20 {strides = array<i32>} : memref<32x128xf32, #tpu.memory_space<vmem>>, vector<32x128xf32>,
    return
  }
  func.func @transform_0(%arg0: i32) -> (i32, i32) {
    %c0_i32 = arith.constant 0 : i32
    %c0_i32_0 = arith.constant 0 : i32
    return %c0_i32, %arg0 : i32, i32
  }
  func.func @transform_1(%arg0: i32) -> (i32, i32) {
    %c0_i32 = arith.constant 0 : i32
    %c0_i32_0 = arith.constant 0 : i32
    %c0_i32_1 = arith.constant 0 : i32
    return %c0_i32, %c0_i32_0 : i32, i32
  }
  func.func @transform_2(%arg0: i32) -> (i32, i32) {
    %c0_i32 = arith.constant 0 : i32
    %c0_i32_0 = arith.constant 0 : i32
    return %c0_i32, %arg0 : i32, i32
  }
}

</mosaic_0001>

<bundles_post_ra>
// kernel: tpu_custom_call.1
= control target key start
LH: loop header
LB: loop body
LE: loop exit
PB: predicated region body
PF: predicated region fallthrough
CT: control target
= control target key end

     0   :  { %7 = vsyncpa [#allocation3], 0  ;;  %s1450_s0 = inlined_call_operand.hbm [shape: s32[3,256], index: 0, kind: input, shape index: {}]   ;;  %s1451_s1 = inlined_call_operand.hbm [shape: f32[32,512], index: 1, kind: input, shape index: {}]   ;;  %s1452_s2 = inlined_call_operand.hbm [shape: f32[32,256], index: 2, kind: output, shape index: {}]  }
   0x1   :  { %9 = vsyncpa [#allocation3 + $0x1], 0 }
   0x2   :  { %10 = vsyncpa [#allocation6], 0 }
   0x3   :  { %11 = vsyncpa [#allocation4], 0 }
   0x4   :  { %13 = vsyncpa [#allocation4 + $0x1], 0  ;;  %s1037_s9 = smov 0   ;;  %s1039_s10 = smov 0  }
   0x5   :  { %s1041_s11 = smov 0   ;;  %s1043_s12 = smov 0  }
   0x6 LB: > { %s108_s15 = sshll.u32 %s1451_s1, 4  ;;  %s1061_s16 = sadd.s32 4294967295, %s1013_s12   ;;  %s1013_s12 = sphi %s1043_s12, %s1462_s12   ;;  %s1009_s11 = sphi %s1041_s11, %s1461_s11   ;;  %s1005_s10 = sphi %s1039_s10, %s1460_s10   ;;  %s1001_s9 = sphi %s1037_s9, %s1459_s9   ;;  %s109_s15 = int_to_ptr.hbm [resolvable:$true] %s108_s15 }
   0x7   : > { %p679_p0 = scmp.ge.s32.totalorder %s1013_s12, 1  ;;  %p40_p1 = scmp.eq.s32.totalorder %s1061_s16, 0 }
   0x8   : > { %p97_p2 = scmp.lt.s32.totalorder %s1013_s12, 3  ;;  %s1015_s18 = smov [#allocation5]  }
   0x9   : > { %s110_s19 = sshll.u32 %s1015_s18, 4  ;;  %s1016_s20 = smov 512   ;;  %s111_s19 = int_to_ptr.vmem [resolvable:$true] %s110_s19 }
   0xa   : > { %p1066_p3 = pnand %p679_p0, %p97_p2  ;;  %s1017_s21 = smov 32  }
   0xb   : > { %s678_s22 = sadd.s32 4294967294, %s1013_s12   ;;  %s1077_s23 = sadd.s32 1, %s1013_s12  }
   0xc   : > { %p828_p4 = pneg %p1066_p3  ;;  %s26_s24 = sadd.s32 1, %s1009_s11 }
   0xd   : > { %s23_s25 = ssub.s32 %s1013_s12, %s1077_s23  ;;  %p33_p7 = scmp.ne.s32.totalorder %s1009_s11, %s1005_s10 }
   0xe   : > { %p829_p6 = pnand %p828_p4, %p40_p1  ;;  %p24_p8 = scmp.eq.s32.totalorder %s23_s25, 0 }
   0xf   : > { %p34_p9 = scmp.eq.s32.totalorder %s1013_s12, 0  ;;  %p39_p10 = scmp.ne.s32.totalorder %s1005_s10, %s1001_s9 }
  0x10   : > { %831 = dma.hbm_to_vmem [thread:$0]  (!%p829_p6), %s109_s15, 2048, %s111_s19, [#allocation6], %s1016_s20, %s1016_s20, %s1017_s21  }
  0x11   : > { %p84_p11 = scmp.eq.s32.totalorder %s1061_s16, 1  ;;  %p1093_p12 = por %p40_p1, %p39_p10 }
  0x12   : > { %s1089_s26 = scalar_select %p24_p8, %s1009_s11, %s26_s24  }
  0x13   : > { %p1097_p13 = por %p84_p11, %p33_p7  ;;  %p90_p0 = scmp.eq.s32.totalorder %s678_s22, 1 }
  0x14   : > { %p35_p2 = por %p34_p9, %p33_p7  ;;  %s124_s29 = sand.u32 1, %s1009_s11  }
  0x15   : > { %p1102_p4 = por %p90_p0, %p39_p10  ;;  %p841_p6 = scmp.lt.s32.totalorder %s1013_s12, 2 }
  0x16   : > { %s682_s3 = sshll.u32 %s124_s29, 2  ;;  %s683_s4 = sshll.u32 %s1013_s12, 2 }
  0x17   : > { %s132_s7 = scalar_lea.hbm %s1450_s0, %s683_s4  ;;  %s128_s13 = scalar_lea.vmem [#allocation2], %s682_s3 }
  0x18   : > { %s134_s8 = sshll.u32 %s132_s7, 4  ;;  %s136_s14 = sshll.u32 %s128_s13, 4  ;;  %s135_s8 = int_to_ptr.hbm [resolvable:$true] %s134_s8  ;;  %s137_s14 = int_to_ptr.vmem [resolvable:$true] %s136_s14 }
  0x19   : > { %p1111_p8 = pnand %p841_p6, %p35_p2  ;;  %s125_s18 = scalar_lea.sflag [#allocation3], %s124_s29 }
  0x1a   : > { %s913_s19 = sshra.s32 %s135_s8, 4  ;;  %s920_s24 = scalar_lea.hbm %s1450_s0, 8  ;;  %s914_s19 = int_to_ptr.hbm [resolvable:$true] %s913_s19 }
  0x1b   : > { %s915_s20 = scalar_lea.hbm %s914_s19, 4  ;;  %p917_p9 = pneg %p1111_p8 }
  0x1c   : > { %p916_p7 = scmp.ne.s32.totalorder %s914_s19, %s915_s20  ;;  %p921_p0 = scmp.lt.s32.totalorder %s914_s19, %s1450_s0 }
  0x1d   : > { %p922_p2 = scmp.lt.s32.totalorder %s920_s24, %s915_s20 }
  0x1e   : > { %p918_p10 = pnand %p917_p9, %p916_p7 }
  0x1f   : > { %p923_p6 = por %p922_p2, %p921_p0 }
  0x20   : > { %p919_p11 = pneg %p918_p10 }
  0x22   : > { %p924_p5 = pnand %p923_p6, %p919_p11 }
  0x24   : > { %927 = shalt.err (!%p924_p5)
}
  0x25   : > { %835 = dma.hbm_to_vmem [thread:$0]  (!%p1111_p8), %s135_s8, 64, %s137_s14, %s125_s18  }
  0x26   : > { %145 = sbr.rel (%p1066_p3) target bundleno = 256 (0x100), region = 28  ;;  %s1128_s29 = sand.u32 (!%p1066_p3), 1, %s1005_s10  }
  0x27   : > { %s685_s4 = sshll.u32 (!%p1066_p3), %s1128_s29, 2  ;;  %s148_s5 = scalar_lea.sflag (!%p1066_p3), [#allocation3], %s1128_s29 }
  0x28   : > { %s151_s6 = scalar_lea.vmem (!%p1066_p3), [#allocation2], %s685_s4 }
  0x2b   : > { %988 = dma.done.wait (%p1093_p12), %s148_s5, 64  }
  0x2c   : > { %990 = vsyncadd (%p1093_p12), %s148_s5, 4294967232 }
  0x2d   : > { %992 = dma.done.wait (%p40_p1), [#allocation6], 2048  }
  0x2e   : > { %994 = vsyncadd (%p40_p1), [#allocation6], 4294965248  ;;  %v178_v0 = vld [vmem:[%s151_s6] sm:$0x7]  ;;  %v186_v1 = vlaneseq  ;;  %v1018_v27 = vmov 1.0   ;;  %s687_s17 = sshll.u32 %s1128_s29, 5 }
  0x2f   : > { %v179_v2 = vmul.u32 19349663, %v178_v0  ;;  %v182_v3 = vmul.u32 83492791, %v178_v0  ;;  %s177_s27 = scalar_lea.vmem [#allocation7], %s687_s17  ;;  %s817_s7 = sshll.u32 %s1061_s16, 3 }
  0x30   : > { %v1140_v6 = vshrl.u32 %v186_v1, 7  ;;  %s591_s14 = scalar_lea.hbm %s1452_s2, %s817_s7  ;;  %s592_s15 = sshll.u32 %s177_s27, 4  ;;  %s593_s15 = int_to_ptr.vmem [resolvable:$true] %s592_s15 }
  0x31   : > { %v180_v4 = vrot.slane %v179_v2, 1  ;;  %v183_v5 = vrot.slane %v182_v3, 2  ;;  %s594_s18 = sshll.u32 %s591_s14, 4  ;;  %s581_s16 = scalar_lea.sflag [#allocation4], %s1128_s29  ;;  %s595_s18 = int_to_ptr.hbm [resolvable:$true] %s594_s18 }
  0x32   : > { %v234_v9 = vadd.s32 376, %v1140_v6  ;;  %v233_v10 = vadd.s32 368, %v1140_v6  ;;  %v250_v12 = vadd.s32 504, %v1140_v6  ;;  %v202_v13 = vadd.s32 120, %v1140_v6  ;;  %s957_s19 = sshra.s32 %s595_s18, 4  ;;  %s963_s24 = scalar_lea.hbm %s1452_s2, 64  ;;  %s958_s19 = int_to_ptr.hbm [resolvable:$true] %s957_s19 }
  0x33   : > { %v181_v7 = vxor.u32 %v180_v4, %v178_v0  ;;  %v218_v14 = vadd.s32 248, %v1140_v6  ;;  %v232_v15 = vadd.s32 360, %v1140_v6  ;;  %v249_v16 = vadd.s32 496, %v1140_v6  ;;  %s959_s20 = scalar_lea.hbm %s958_s19, 32  ;;  %p964_p12 = scmp.lt.s32.totalorder %s958_s19, %s1452_s2 }
  0x34   : > { %v201_v17 = vadd.s32 112, %v1140_v6  ;;  %v217_v18 = vadd.s32 240, %v1140_v6  ;;  %v231_v20 = vadd.s32 352, %v1140_v6  ;;  %v248_v21 = vadd.s32 488, %v1140_v6  ;;  %p960_p1 = scmp.ne.s32.totalorder %s958_s19, %s959_s20  ;;  %p965_p8 = scmp.lt.s32.totalorder %s963_s24, %s959_s20 }
  0x35   : > { %v184_v8 = vxor.u32 %v183_v5, %v181_v7  ;;  %v200_v22 = vadd.s32 104, %v1140_v6  ;;  %v216_v23 = vadd.s32 232, %v1140_v6  ;;  %v230_v24 = vadd.s32 344, %v1140_v6 }
  0x36   : > { %v247_v25 = vadd.s32 480, %v1140_v6  ;;  %v199_v26 = vadd.s32 96, %v1140_v6  ;;  %v215_v28 = vadd.s32 224, %v1140_v6  ;;  %v246_v29 = vadd.s32 472, %v1140_v6  ;;  %p961_p3 = pnand %p960_p1, %p1097_p13  ;;  %p966_p7 = por %p965_p8, %p964_p12 }
  0x37   : > { %v185_v11 = vand.u32 511, %v184_v8  ;;  %v198_v30 = vadd.s32 88, %v1140_v6  ;;  %v214_v31 = vadd.s32 216, %v1140_v6  ;;  %v229_v32 = vadd.s32 336, %v1140_v6 }
  0x38   : > { %v245_v33 = vadd.s32 464, %v1140_v6  ;;  %v197_v34 = vadd.s32 80, %v1140_v6  ;;  %v213_v35 = vadd.s32 208, %v1140_v6  ;;  %v228_v36 = vadd.s32 328, %v1140_v6  ;;  %p962_p5 = pneg %p961_p3 }
  0x39   : > { %v1151_v19 = vperm.slane %v185_v11, 0  ;;  %v244_v37 = vadd.s32 456, %v1140_v6  ;;  %v196_v38 = vadd.s32 72, %v1140_v6  ;;  %v212_v39 = vadd.s32 200, %v1140_v6 }
  0x3a   : > { %v227_v40 = vadd.s32 320, %v1140_v6  ;;  %v243_v41 = vadd.s32 448, %v1140_v6  ;;  %v195_v42 = vadd.s32 64, %v1140_v6  ;;  %v211_v43 = vadd.s32 192, %v1140_v6  ;;  %p967_p9 = pnand %p966_p7, %p962_p5 }
  0x3b   : > { %vm299_vm0 = vcmp.eq.s32.totalorder %v234_v9, %v1151_v19  ;;  %vm298_vm1 = vcmp.eq.s32.totalorder %v233_v10, %v1151_v19  ;;  %vm315_vm2 = vcmp.eq.s32.totalorder %v250_v12, %v1151_v19  ;;  %vm267_vm3 = vcmp.eq.s32.totalorder %v202_v13, %v1151_v19  ;;  %v446_v12 = vld [vmem:[#allocation5 + $0x10] sm:$0xff]  ;;  %v447_v13 = vld [vmem:[#allocation5 + $0x18] sm:$0xff] }
  0x3c   : > { %784 = vmatpush.msk.msra.mxu2 %vm299_vm0, %v1018_v27  ;;  %800 = vmatpush.msk.msra.mxu3 %vm315_vm2, %v1018_v27  ;;  %vm283_vm4 = vcmp.eq.s32.totalorder %v218_v14, %v1151_v19  ;;  %vm314_vm5 = vcmp.eq.s32.totalorder %v249_v16, %v1151_v19  ;;  %vm297_vm6 = vcmp.eq.s32.totalorder %v232_v15, %v1151_v19  ;;  %v226_v44 = vadd.s32 312, %v1140_v6  ;;  %v444_v14 = vld [vmem:[#allocation5] sm:$0xff]  ;;  %v445_v15 = vld [vmem:[#allocation5 + $0x8] sm:$0xff]  ;;  %v450_v16 = vld [vmem:[#allocation5 + $0x30] sm:$0xff] }
  0x3d   : > { %752 = vmatpush.msk.msra.mxu0 %vm267_vm3, %v1018_v27  ;;  %768 = vmatpush.msk.msra.mxu1 %vm283_vm4, %v1018_v27  ;;  %vm266_vm7 = vcmp.eq.s32.totalorder %v201_v17, %v1151_v19  ;;  %vm282_vm8 = vcmp.eq.s32.totalorder %v217_v18, %v1151_v19  ;;  %vm313_vm9 = vcmp.eq.s32.totalorder %v248_v21, %v1151_v19  ;;  %v242_v45 = vadd.s32 440, %v1140_v6  ;;  %v451_v17 = vld [vmem:[#allocation5 + $0x38] sm:$0xff]  ;;  %v448_v18 = vld [vmem:[#allocation5 + $0x20] sm:$0xff] }
  0x3e   : > { %785 = vmatpush.msk.msra.mxu2 %vm298_vm1, %v1018_v27  ;;  %801 = vmatpush.msk.msra.mxu3 %vm314_vm5, %v1018_v27  ;;  %vm265_vm10 = vcmp.eq.s32.totalorder %v200_v22, %v1151_v19  ;;  %vm281_vm11 = vcmp.eq.s32.totalorder %v216_v23, %v1151_v19  ;;  %vm296_vm12 = vcmp.eq.s32.totalorder %v231_v20, %v1151_v19  ;;  %v194_v46 = vadd.s32 56, %v1140_v6  ;;  %v455_v20 = vld [vmem:[#allocation5 + $0x58] sm:$0xff]  ;;  %v452_v21 = vld [vmem:[#allocation5 + $0x40] sm:$0xff]  ;;  %v453_v22 = vld [vmem:[#allocation5 + $0x48] sm:$0xff] }
  0x3f   : > { %753 = vmatpush.msk.msra.mxu0 %vm266_vm7, %v1018_v27  ;;  %769 = vmatpush.msk.msra.mxu1 %vm282_vm8, %v1018_v27  ;;  %vm312_vm13 = vcmp.eq.s32.totalorder %v247_v25, %v1151_v19  ;;  %vm264_vm14 = vcmp.eq.s32.totalorder %v199_v26, %v1151_v19  ;;  %vm280_vm15 = vcmp.eq.s32.totalorder %v215_v28, %v1151_v19  ;;  %v210_v47 = vadd.s32 184, %v1140_v6  ;;  %v458_v23 = vld [vmem:[#allocation5 + $0x70] sm:$0xff]  ;;  %v456_v25 = vld [vmem:[#allocation5 + $0x60] sm:$0xff]  ;;  %v457_v26 = vld [vmem:[#allocation5 + $0x68] sm:$0xff] }
  0x40   : > { %786 = vmatpush.msk.msra.mxu2 %vm297_vm6, %v1018_v27  ;;  %802 = vmatpush.msk.msra.mxu3 %vm313_vm9, %v1018_v27  ;;  %vm295_vm0 = vcmp.eq.s32.totalorder %v230_v24, %v1151_v19  ;;  %vm311_vm1 = vcmp.eq.s32.totalorder %v246_v29, %v1151_v19  ;;  %vm263_vm2 = vcmp.eq.s32.totalorder %v198_v30, %v1151_v19  ;;  %v225_v48 = vadd.s32 304, %v1140_v6  ;;  %v459_v24 = vld [vmem:[#allocation5 + $0x78] sm:$0xff] }
  0x41   : > { %754 = vmatpush.msk.msra.mxu0 %vm265_vm10, %v1018_v27  ;;  %770 = vmatpush.msk.msra.mxu1 %vm281_vm11, %v1018_v27  ;;  %vm279_vm3 = vcmp.eq.s32.totalorder %v214_v31, %v1151_v19  ;;  %vm294_vm4 = vcmp.eq.s32.totalorder %v229_v32, %v1151_v19  ;;  %vm310_vm5 = vcmp.eq.s32.totalorder %v245_v33, %v1151_v19  ;;  %v241_v49 = vadd.s32 432, %v1140_v6 }
  0x42   : > { %787 = vmatpush.msk.msra.mxu2 %vm296_vm12, %v1018_v27  ;;  %803 = vmatpush.msk.msra.mxu3 %vm312_vm13, %v1018_v27  ;;  %vm262_vm6 = vcmp.eq.s32.totalorder %v197_v34, %v1151_v19  ;;  %vm278_vm7 = vcmp.eq.s32.totalorder %v213_v35, %v1151_v19  ;;  %vm293_vm8 = vcmp.eq.s32.totalorder %v228_v36, %v1151_v19  ;;  %v193_v50 = vadd.s32 48, %v1140_v6 }
  0x43   : > { %755 = vmatpush.msk.msra.mxu0 %vm264_vm14, %v1018_v27  ;;  %771 = vmatpush.msk.msra.mxu1 %vm280_vm15, %v1018_v27  ;;  %vm309_vm9 = vcmp.eq.s32.totalorder %v244_v37, %v1151_v19  ;;  %vm261_vm10 = vcmp.eq.s32.totalorder %v196_v38, %v1151_v19  ;;  %vm277_vm11 = vcmp.eq.s32.totalorder %v212_v39, %v1151_v19  ;;  %v209_v51 = vadd.s32 176, %v1140_v6 }
  0x44   : > { %788 = vmatpush.msk.msra.mxu2 %vm295_vm0, %v1018_v27  ;;  %804 = vmatpush.msk.msra.mxu3 %vm311_vm1, %v1018_v27  ;;  %vm292_vm12 = vcmp.eq.s32.totalorder %v227_v40, %v1151_v19  ;;  %vm308_vm13 = vcmp.eq.s32.totalorder %v243_v41, %v1151_v19  ;;  %vm260_vm14 = vcmp.eq.s32.totalorder %v195_v42, %v1151_v19  ;;  %v224_v52 = vadd.s32 296, %v1140_v6 }
  0x45   : > { %756 = vmatpush.msk.msra.mxu0 %vm263_vm2, %v1018_v27  ;;  %772 = vmatpush.msk.msra.mxu1 %vm279_vm3, %v1018_v27  ;;  %vm276_vm15 = vcmp.eq.s32.totalorder %v211_v43, %v1151_v19  ;;  %vm291_vm0 = vcmp.eq.s32.totalorder %v226_v44, %v1151_v19  ;;  %vm307_vm1 = vcmp.eq.s32.totalorder %v242_v45, %v1151_v19  ;;  %v240_v53 = vadd.s32 424, %v1140_v6 }
  0x46   : > { %789 = vmatpush.msk.msra.mxu2 %vm294_vm4, %v1018_v27  ;;  %805 = vmatpush.msk.msra.mxu3 %vm310_vm5, %v1018_v27  ;;  %vm259_vm2 = vcmp.eq.s32.totalorder %v194_v46, %v1151_v19  ;;  %vm275_vm3 = vcmp.eq.s32.totalorder %v210_v47, %v1151_v19  ;;  %v192_v54 = vadd.s32 40, %v1140_v6  ;;  %v208_v55 = vadd.s32 168, %v1140_v6 }
  0x47   : > { %757 = vmatpush.msk.msra.mxu0 %vm262_vm6, %v1018_v27  ;;  %773 = vmatpush.msk.msra.mxu1 %vm278_vm7, %v1018_v27  ;;  %vm290_vm4 = vcmp.eq.s32.totalorder %v225_v48, %v1151_v19  ;;  %vm306_vm5 = vcmp.eq.s32.totalorder %v241_v49, %v1151_v19  ;;  %v223_v56 = vadd.s32 288, %v1140_v6  ;;  %v239_v57 = vadd.s32 416, %v1140_v6 }
  0x48   : > { %790 = vmatpush.msk.msra.mxu2 %vm293_vm8, %v1018_v27  ;;  %806 = vmatpush.msk.msra.mxu3 %vm309_vm9, %v1018_v27  ;;  %vm258_vm6 = vcmp.eq.s32.totalorder %v193_v50, %v1151_v19  ;;  %vm274_vm7 = vcmp.eq.s32.totalorder %v209_v51, %v1151_v19  ;;  %v191_v58 = vadd.s32 32, %v1140_v6  ;;  %v207_v59 = vadd.s32 160, %v1140_v6 }
  0x49   : > { %758 = vmatpush.msk.msra.mxu0 %vm261_vm10, %v1018_v27  ;;  %774 = vmatpush.msk.msra.mxu1 %vm277_vm11, %v1018_v27  ;;  %vm289_vm8 = vcmp.eq.s32.totalorder %v224_v52, %v1151_v19  ;;  %vm305_vm9 = vcmp.eq.s32.totalorder %v240_v53, %v1151_v19  ;;  %v222_v60 = vadd.s32 280, %v1140_v6  ;;  %v238_v61 = vadd.s32 408, %v1140_v6 }
  0x4a   : > { %791 = vmatpush.msk.msra.mxu2 %vm292_vm12, %v1018_v27  ;;  %807 = vmatpush.msk.msra.mxu3 %vm308_vm13, %v1018_v27  ;;  %vm257_vm10 = vcmp.eq.s32.totalorder %v192_v54, %v1151_v19  ;;  %vm273_vm11 = vcmp.eq.s32.totalorder %v208_v55, %v1151_v19  ;;  %v190_v62 = vadd.s32 24, %v1140_v6  ;;  %v206_v63 = vadd.s32 152, %v1140_v6 }
  0x4b   : > { %759 = vmatpush.msk.msra.mxu0 %vm260_vm14, %v1018_v27  ;;  %775 = vmatpush.msk.msra.mxu1 %vm276_vm15, %v1018_v27  ;;  %vm288_vm12 = vcmp.eq.s32.totalorder %v223_v56, %v1151_v19  ;;  %vm304_vm13 = vcmp.eq.s32.totalorder %v239_v57, %v1151_v19  ;;  %v221_v0 = vadd.s32 272, %v1140_v6  ;;  %v237_v1 = vadd.s32 400, %v1140_v6 }
  0x4c   : > { %792 = vmatpush.msk.msra.mxu2 %vm291_vm0, %v1018_v27  ;;  %808 = vmatpush.msk.msra.mxu3 %vm307_vm1, %v1018_v27  ;;  %vm256_vm14 = vcmp.eq.s32.totalorder %v191_v58, %v1151_v19  ;;  %vm272_vm15 = vcmp.eq.s32.totalorder %v207_v59, %v1151_v19  ;;  %v189_v2 = vadd.s32 16, %v1140_v6  ;;  %v205_v3 = vadd.s32 144, %v1140_v6 }
  0x4d   : > { %760 = vmatpush.msk.msra.mxu0 %vm259_vm2, %v1018_v27  ;;  %776 = vmatpush.msk.msra.mxu1 %vm275_vm3, %v1018_v27  ;;  %vm287_vm0 = vcmp.eq.s32.totalorder %v222_v60, %v1151_v19  ;;  %vm303_vm1 = vcmp.eq.s32.totalorder %v238_v61, %v1151_v19  ;;  %v220_v4 = vadd.s32 264, %v1140_v6  ;;  %v236_v5 = vadd.s32 392, %v1140_v6 }
  0x4e   : > { %793 = vmatpush.msk.msra.mxu2 %vm290_vm4, %v1018_v27  ;;  %809 = vmatpush.msk.msra.mxu3 %vm306_vm5, %v1018_v27  ;;  %vm255_vm2 = vcmp.eq.s32.totalorder %v190_v62, %v1151_v19  ;;  %vm271_vm3 = vcmp.eq.s32.totalorder %v206_v63, %v1151_v19  ;;  %v188_v7 = vadd.s32 8, %v1140_v6  ;;  %v204_v8 = vadd.s32 136, %v1140_v6 }
  0x4f   : > { %761 = vmatpush.msk.msra.mxu0 %vm258_vm6, %v1018_v27  ;;  %777 = vmatpush.msk.msra.mxu1 %vm274_vm7, %v1018_v27  ;;  %vm286_vm4 = vcmp.eq.s32.totalorder %v221_v0, %v1151_v19  ;;  %vm302_vm5 = vcmp.eq.s32.totalorder %v237_v1, %v1151_v19  ;;  %v219_v9 = vadd.s32 256, %v1140_v6  ;;  %v235_v10 = vadd.s32 384, %v1140_v6 }
  0x50   : > { %794 = vmatpush.msk.msra.mxu2 %vm289_vm8, %v1018_v27  ;;  %810 = vmatpush.msk.msra.mxu3 %vm305_vm9, %v1018_v27  ;;  %vm254_vm6 = vcmp.eq.s32.totalorder %v189_v2, %v1151_v19  ;;  %vm270_vm7 = vcmp.eq.s32.totalorder %v205_v3, %v1151_v19  ;;  %vm285_vm8 = vcmp.eq.s32.totalorder %v220_v4, %v1151_v19  ;;  %v203_v11 = vadd.s32 128, %v1140_v6 }
  0x51   : > { %762 = vmatpush.msk.msra.mxu0 %vm257_vm10, %v1018_v27  ;;  %778 = vmatpush.msk.msra.mxu1 %vm273_vm11, %v1018_v27  ;;  %vm301_vm9 = vcmp.eq.s32.totalorder %v236_v5, %v1151_v19  ;;  %vm253_vm10 = vcmp.eq.s32.totalorder %v188_v7, %v1151_v19  ;;  %vm269_vm11 = vcmp.eq.s32.totalorder %v204_v8, %v1151_v19 }
  0x52   : > { %795 = vmatpush.msk.msra.mxu2 %vm288_vm12, %v1018_v27  ;;  %811 = vmatpush.msk.msra.mxu3 %vm304_vm13, %v1018_v27  ;;  %vm284_vm12 = vcmp.eq.s32.totalorder %v219_v9, %v1151_v19  ;;  %vm300_vm13 = vcmp.eq.s32.totalorder %v235_v10, %v1151_v19 }
  0x53   : > { %763 = vmatpush.msk.msra.mxu0 %vm256_vm14, %v1018_v27  ;;  %779 = vmatpush.msk.msra.mxu1 %vm272_vm15, %v1018_v27  ;;  %vm252_vm14 = vcmp.eq.s32.totalorder %v1140_v6, %v1151_v19  ;;  %vm268_vm15 = vcmp.eq.s32.totalorder %v203_v11, %v1151_v19  ;;  %v449_v6 = vld [vmem:[#allocation5 + $0x28] sm:$0xff]  ;;  %v454_v19 = vld [vmem:[#allocation5 + $0x50] sm:$0xff] }
  0x54   : > { %796 = vmatpush.msk.msra.mxu2 %vm287_vm0, %v1018_v27  ;;  %812 = vmatpush.msk.msra.mxu3 %vm303_vm1, %v1018_v27 }
  0x55   : > { %764 = vmatpush.msk.msra.mxu0 %vm255_vm2, %v1018_v27  ;;  %780 = vmatpush.msk.msra.mxu1 %vm271_vm3, %v1018_v27 }
  0x56   : > { %797 = vmatpush.msk.msra.mxu2 %vm286_vm4, %v1018_v27  ;;  %813 = vmatpush.msk.msra.mxu3 %vm302_vm5, %v1018_v27 }
  0x57   : > { %765 = vmatpush.msk.msra.mxu0 %vm254_vm6, %v1018_v27  ;;  %781 = vmatpush.msk.msra.mxu1 %vm270_vm7, %v1018_v27 }
  0x58   : > { %798 = vmatpush.msk.msra.mxu2 %vm285_vm8, %v1018_v27  ;;  %814 = vmatpush.msk.msra.mxu3 %vm301_vm9, %v1018_v27 }
  0x59   : > { %766 = vmatpush.msk.msra.mxu0 %vm253_vm10, %v1018_v27  ;;  %782 = vmatpush.msk.msra.mxu1 %vm269_vm11, %v1018_v27 }
  0x5a   : > { %799 = vmatpush.msk.msra.mxu2 %vm284_vm12, %v1018_v27  ;;  %815 = vmatpush.msk.msra.mxu3 %vm300_vm13, %v1018_v27 }
  0x5b   : > { %534 = vmatmul.f32.vlgmr.msra.gmra.mxu2 %v446_v12  ;;  %563 = vmatmul.f32.vlgmr.msra.gmra.mxu3 %v447_v13 }
  0x5c   : > { %767 = vmatpush.msk.msra.mxu0 %vm252_vm14, %v1018_v27  ;;  %783 = vmatpush.msk.msra.mxu1 %vm268_vm15, %v1018_v27 }
  0x5d   : > { %476 = vmatmul.f32.vlgmr.msra.gmra.mxu0 %v444_v14  ;;  %505 = vmatmul.f32.vlgmr.msra.gmra.mxu1 %v445_v15 }
  0x63   : > { %537 = vmatmul.f32.gmra.mxu2 %v450_v16  ;;  %566 = vmatmul.f32.gmra.mxu3 %v451_v17 }
  0x65   : > { %479 = vmatmul.f32.gmra.mxu0 %v448_v18  ;;  %508 = vmatmul.f32.gmra.mxu1 %v449_v6 }
  0x6b   : > { %540 = vmatmul.f32.gmra.mxu2 %v454_v19  ;;  %569 = vmatmul.f32.gmra.mxu3 %v455_v20 }
  0x6d   : > { %482 = vmatmul.f32.gmra.mxu0 %v452_v21  ;;  %511 = vmatmul.f32.gmra.mxu1 %v453_v22 }
  0x73   : > { %543 = vmatmul.f32.gmra.mxu2 %v458_v23  ;;  %572 = vmatmul.f32.gmra.mxu3 %v459_v24 }
  0x75   : > { %485 = vmatmul.f32.gmra.mxu0 %v456_v25  ;;  %514 = vmatmul.f32.gmra.mxu1 %v457_v26 }
  0xda   : > { %v477_v27 = vpop.f32.mrf.mxu0  ;;  %v506_v28 = vpop.f32.mrf.mxu1 }
  0xdb   : > { %v507_v29 = vadd.f32 %v506_v28, %v477_v27 }
  0xde   : > { %v535_v30 = vpop.f32.mrf.mxu2  ;;  %v564_v31 = vpop.f32.mrf.mxu3 }
  0xdf   : > { %v536_v32 = vadd.f32 %v535_v30, %v507_v29 }
  0xe1   : > { %v565_v33 = vadd.f32 %v564_v31, %v536_v32 }
  0xe2   : > { %v480_v34 = vpop.f32.mrf.mxu0  ;;  %v509_v35 = vpop.f32.mrf.mxu1 }
  0xe3   : > { %576 = vst [vmem:[%s177_s27] sm:$0xff] %v565_v33  ;;  %v510_v36 = vadd.f32 %v509_v35, %v480_v34 }
  0xe6   : > { %v538_v37 = vpop.f32.mrf.mxu2  ;;  %v567_v38 = vpop.f32.mrf.mxu3 }
  0xe7   : > { %v539_v39 = vadd.f32 %v538_v37, %v510_v36 }
  0xe9   : > { %v568_v40 = vadd.f32 %v567_v38, %v539_v39 }
  0xea   : > { %v483_v41 = vpop.f32.mrf.mxu0  ;;  %v512_v42 = vpop.f32.mrf.mxu1 }
  0xeb   : > { %577 = vst [vmem:[%s177_s27 + $0x8] sm:$0xff] %v568_v40  ;;  %v513_v43 = vadd.f32 %v512_v42, %v483_v41 }
  0xee   : > { %v541_v44 = vpop.f32.mrf.mxu2  ;;  %v570_v45 = vpop.f32.mrf.mxu3 }
  0xef   : > { %v542_v46 = vadd.f32 %v541_v44, %v513_v43 }
  0xf1   : > { %v571_v47 = vadd.f32 %v570_v45, %v542_v46 }
  0xf2   : > { %v486_v48 = vpop.f32.mrf.mxu0  ;;  %v515_v49 = vpop.f32.mrf.mxu1 }
  0xf3   : > { %578 = vst [vmem:[%s177_s27 + $0x10] sm:$0xff] %v571_v47  ;;  %v516_v50 = vadd.f32 %v515_v49, %v486_v48 }
  0xf6   : > { %v544_v51 = vpop.f32.mrf.mxu2  ;;  %v573_v52 = vpop.f32.mrf.mxu3 }
  0xf7   : > { %v545_v53 = vadd.f32 %v544_v51, %v516_v50 }
  0xf9   : > { %v574_v54 = vadd.f32 %v573_v52, %v545_v53 }
  0xfb   : > { %579 = vst [vmem:[%s177_s27 + $0x18] sm:$0xff] %v574_v54 }
  0xfc   : > { %970 = shalt.err (!%p967_p9)
}
  0xfd   : > { %s1019_s29 = smov 128   ;;  %s1020_s4 = smov 256  }
  0xfe   : > { %s1021_s5 = smov 8  }
  0xff   : > { %826 = dma.vmem_to_hbm [thread:$0]  (%p1097_p13), %s593_s15, 512, %s595_s18, %s581_s16, %s1019_s29, %s1020_s4, %s1021_s5  }
 0x100 PF: > { %s609_s6 = sand.u32 1, %s1001_s9   ;;  %p1458_p10 = scmp.ge.s32.totalorder %s1013_s12, 2 }
 0x101   : > { %s610_s17 = scalar_lea.sflag [#allocation4], %s609_s6 }
 0x102   : > { %p837_p11 = pnand %p1458_p10, %p1102_p4 }
 0x104   : > { %p838_p0 = pneg %p837_p11 }
 0x106   : > { %996 = dma.done.wait (%p838_p0), %s610_s17, 512  }
 0x107   : > { %998 = vsyncadd (%p838_p0), %s610_s17, 4294966784  ;;  %p16_p2 = scmp.ge.s32.totalorder %s1077_s23, 4   ;;  %s1459_s9 = smov %s1005_s10 }
 0x108   : > { %s1460_s10 = smov %s1009_s11  ;;  %s1461_s11 = smov %s1089_s26 }
 0x109   : > { %s1462_s12 = smov %s1077_s23  ;;  %18 = sbr.rel (!%p16_p2) target bundleno = 6 (0x6), region = 77 }
 0x10e   :  { %616 = vsyncpa [#allocation3], 1 }
 0x10f   :  { %618 = vsyncpa [#allocation3 + $0x1], 1 }
 0x110   :  { %619 = vsyncpa [#allocation6], 1 }
 0x111   :  { %620 = vsyncpa [#allocation4], 1 }
 0x112   :  { %622 = vsyncpa [#allocation4 + $0x1], 1 }

</bundles_post_ra>
